<compile_context>
chip_gen: v5e
topology: v5e:2x2
jax: 0.10.0
libtpu: 0.0.40
codegen_flags: <defaults>
</compile_context>

<pallas_src>
import functools

import jax
import jax.numpy as jnp
from jax import lax
from jax.experimental import pallas as pl
from jax.experimental.pallas import tpu as pltpu


def _round_up(x, m):
    return (x + m - 1) // m * m


def _vmem_budget_bytes():
    """Per-generation scoped-VMEM budget (v5e/v6e: 128 MiB phys, v7x: 64 MiB)."""
    cap = 128 << 20
    try:
        info = pltpu.get_tpu_info()
        cap = int(getattr(info, "vmem_capacity_bytes", cap))
    except Exception:
        pass
    # Leave ~1/8 for compiler-internal scratch; never ask for more than 100 MiB.
    return int(min(cap * 7 // 8, 100 << 20))


def _fasttext_kernel(inv_cnt_ref, emb_ref, w_ref, b_ref, out_ref, acc_ref, *,
                     use_relu, sub_rows):
    """Grid = (batch tiles, seq tiles); seq is the reduction axis (last).

    inv_cnt_ref: (TB, 1) f32     emb_ref: (TS, TB, D) bf16/f32
    w_ref:       (D, Cp) f32     b_ref:   (1, Cp) f32
    out_ref:     (TB, Cp) f32    acc_ref: (TB, D) f32 scratch
    """
    s = pl.program_id(1)

    @pl.when(s == 0)
    def _init():
        acc_ref[...] = jnp.zeros_like(acc_ref)

    n_sub = emb_ref.shape[0] // sub_rows

    def body(i, carry):
        off = pl.multiple_of(i * sub_rows, sub_rows)
        blk = emb_ref[pl.ds(off, sub_rows)]                 # (sub, TB, D)
        # Leading-axis reduction: pure VALU adds, output already (TB, D).
        acc_ref[...] += jnp.sum(blk.astype(jnp.float32), axis=0)
        return carry

    lax.fori_loop(0, n_sub, body, 0, unroll=n_sub <= 4)

    @pl.when(s == pl.num_programs(1) - 1)
    def _finalize():
        pooled = acc_ref[...] * inv_cnt_ref[...]            # mean over non-pad
        if use_relu:
            pooled = jnp.maximum(pooled, 0.0)
        # TODO(synk): nn.Dropout is identity in eval mode; training-time
        # dropout (pltpu.prng_*) is not implemented.
        logits = jnp.dot(pooled, w_ref[...], preferred_element_type=jnp.float32)
        out_ref[...] = (logits + b_ref[...]).astype(out_ref.dtype)


def fasttext_forward(token_ids, emb_table, fc_w_t, fc_b, *, padding_idx,
                     use_relu, block_b=None, block_s=None,
                     emb_stream_dtype=jnp.bfloat16):
    """token_ids: (B, S) int; emb_table: (V, D); fc_w_t: (D, C); fc_b: (C,)."""
    B, S = token_ids.shape
    V, D = emb_table.shape
    C = fc_w_t.shape[1]
    e_item = jnp.dtype(emb_stream_dtype).itemsize

    # --- batch tile: <=128, multiple of 16 (bf16 sublane packing); prefer
    # >=2 tiles when the batch allows so the "parallel" axis can shard across
    # v7x's two TensorCores.
    if block_b is not None:
        TB = _round_up(max(16, min(block_b, _round_up(B, 16))), 16)
    else:
        tb_full = _round_up(B, 16)
        if tb_full > 128:
            TB = 128
        elif tb_full >= 64:
            TB = _round_up(tb_full // 2, 16)
        else:
            TB = tb_full
    Bp = _round_up(B, TB)

    Cp = _round_up(max(C, 128), 128)          # lane-dense fc / output tiles
    # TODO(synk): for num_classes in the thousands, tile the class axis (or
    # pipeline_mode=pl.Buffered(1) on the constant w/b specs) instead of one
    # resident (D, Cp) block.

    # In-kernel accumulation sub-chunk: keep the f32 cast temporary ~<=2 MiB.
    sub_rows = (2 << 20) // max(TB * D * 4, 1)
    sub_rows = 32 if sub_rows >= 32 else (16 if sub_rows >= 16 else 8)

    # --- seq tile: big streaming blocks (multiple of 32), shrunk to fit the
    # per-generation VMEM budget with double-buffering intact.
    ts_target = 512 if e_item <= 2 else 256
    if block_s is not None:
        TS = max(32, _round_up(block_s, 32))
    else:
        TS = min(ts_target, _round_up(S, 32))

    resident = (TB * D * 4                      # accumulator scratch
                + 2 * D * Cp * 4 + 2 * Cp * 4   # fc weight + bias (dbl-buffered)
                + 2 * TB * Cp * 4               # output (dbl-buffered)
                + 2 * TB * 4                    # inv_cnt
                + 2 * sub_rows * TB * D * 4)    # in-kernel f32 cast/sum temps
    budget = _vmem_budget_bytes()

    def _need(ts):
        return 2 * ts * TB * D * e_item + resident + (2 << 20)

    while TS > 32 and _need(TS) > budget:
        TS = max(32, _round_up(TS // 2, 32))
    Sp = _round_up(S, TS)
    vmem_limit = int(min(max(_need(TS), 16 << 20), budget))

    # --- JAX glue: counts + padded gather in the (S, B, D) streaming layout.
    # TODO(synk): fuse this gather into the kernel for small/medium vocabs
    # (VMEM-resident table) to avoid the HBM round trip of the emb stream.
    cnt = jnp.sum(token_ids != padding_idx, axis=1)
    # Clamp so an all-padding row yields 0 (not NaN) after pooling.
    inv_cnt = 1.0 / jnp.maximum(cnt, 1).astype(jnp.float32)
    inv_cnt = jnp.pad(inv_cnt, (0, Bp - B))[:, None]            # (Bp, 1)

    # Appended exactly-zero row; padded positions index it so padding never
    # perturbs the pooled sum even if the table's padding_idx row is nonzero.
    table_s = jnp.concatenate(
        [emb_table.astype(emb_stream_dtype),
         jnp.zeros((1, D), emb_stream_dtype)], axis=0)
    ids = jnp.pad(token_ids.astype(jnp.int32), ((0, Bp - B), (0, Sp - S)),
                  constant_values=V)
    emb = jnp.take(table_s, ids.T, axis=0)                      # (Sp, Bp, D)

    w = jnp.zeros((D, Cp), jnp.float32).at[:, :C].set(fc_w_t.astype(jnp.float32))
    b = jnp.zeros((1, Cp), jnp.float32).at[:, :C].set(fc_b.astype(jnp.float32))

    kernel = functools.partial(_fasttext_kernel, use_relu=use_relu,
                               sub_rows=sub_rows)
    out = pl.pallas_call(
        kernel,
        out_shape=jax.ShapeDtypeStruct((Bp, Cp), jnp.float32),
        grid_spec=pltpu.PrefetchScalarGridSpec(
            num_scalar_prefetch=0,
            grid=(Bp // TB, Sp // TS),
            in_specs=[
                pl.BlockSpec((TB, 1), lambda bi, si: (bi, 0)),
                pl.BlockSpec((TS, TB, D), lambda bi, si: (si, bi, 0)),
                pl.BlockSpec((D, Cp), lambda bi, si: (0, 0)),
                pl.BlockSpec((1, Cp), lambda bi, si: (0, 0)),
            ],
            out_specs=pl.BlockSpec((TB, Cp), lambda bi, si: (bi, 0)),
            scratch_shapes=[pltpu.VMEM((TB, D), jnp.float32)],
        ),
        compiler_params=pltpu.CompilerParams(
            dimension_semantics=("parallel", "arbitrary"),
            vmem_limit_bytes=vmem_limit,
        ),
    )(inv_cnt, emb, w, b)
    return out[:B, :C]


if __name__ == "__main__":
    # Small deterministic config.
    vocab_size = 64
    embedding_dim = 128
    padding_idx = 0
    num_classes = 8
    use_relu = True
    batch, seq = 16, 32

    key = jax.random.PRNGKey(0)
    k_emb, k_w, k_b, k_tok = jax.random.split(key, 4)

    emb_table = jax.random.normal(k_emb, (vocab_size, embedding_dim), jnp.float32) * 0.1
    # nn.Embedding(padding_idx=...) zero-initializes the padding row.
    emb_table = emb_table.at[padding_idx].set(0.0)
    fc_w = jax.random.normal(k_w, (num_classes, embedding_dim), jnp.float32) * 0.05
    fc_b = jax.random.normal(k_b, (num_classes,), jnp.float32) * 0.01
    fc_w_t = fc_w.T  # (D, C)

    token_ids = jax.random.randint(k_tok, (batch, seq), 0, vocab_size, jnp.int32)
    # Ensure at least one non-pad token per row (like real data).
    token_ids = token_ids.at[:, 0].set(1)

    out = fasttext_forward(token_ids, emb_table, fc_w_t, fc_b,
                           padding_idx=padding_idx, use_relu=use_relu)
    out = jax.block_until_ready(out)

    # Pure-JAX reference.  The kernel streams bf16 embeddings (f32 accumulate),
    # so the reference uses the same bf16-quantized table for a tight check.
    table_q = emb_table.astype(jnp.bfloat16).astype(jnp.float32)
    mask = (token_ids != padding_idx)
    e = jnp.take(table_q, token_ids, axis=0)
    pooled = e.sum(axis=1) / mask.sum(axis=1, keepdims=True).astype(jnp.float32)
    pooled = jnp.maximum(pooled, 0.0) if use_relu else pooled
    ref = pooled @ fc_w_t + fc_b

    assert out.shape == (batch, num_classes)
    assert jnp.allclose(out, ref, atol=1e-4, rtol=1e-4), "mismatch vs reference"

    print("KERNEL_OK")
</pallas_src>

<mosaic_0001>
module attributes {stable_mosaic.version = 11 : i64} {
  func.func @_fasttext_kernel(%arg0: i32, %arg1: i32, %arg2: memref<16x1xf32, #tpu.memory_space<vmem>>, %arg3: memref<32x16x128xbf16, #tpu.memory_space<vmem>>, %arg4: memref<128x128xf32, #tpu.memory_space<vmem>>, %arg5: memref<1x128xf32, #tpu.memory_space<vmem>>, %arg6: memref<16x128xf32, #tpu.memory_space<vmem>>, %arg7: memref<16x128xf32, #tpu.memory_space<vmem>>) attributes {dimension_semantics = [#tpu.dimension_semantics<parallel>, #tpu.dimension_semantics<arbitrary>], iteration_bounds = array<i64: 1, 1>, scalar_prefetch = 0 : i64, scratch_operands = 1 : i64, tpu.core_type = #tpu.core_type<tc>, window_params = [{transform_indices = @transform_0, window_bounds = array<i64: 16, 1>}, {transform_indices = @transform_1, window_bounds = array<i64: 32, 16, 128>}, {pipeline_mode = #tpu.pipeline_mode<synchronous>, transform_indices = @transform_2, window_bounds = array<i64: 128, 128>}, {pipeline_mode = #tpu.pipeline_mode<synchronous>, transform_indices = @transform_3, window_bounds = array<i64: 1, 128>}, {transform_indices = @transform_4, window_bounds = array<i64: 16, 128>}]} {
    %c0_i32 = arith.constant 0 : i32
    %0 = arith.cmpi eq, %arg1, %c0_i32 : i32
    %1 = arith.extui %0 : i1 to i32
    %c0_i32_0 = arith.constant 0 : i32
    %2 = arith.cmpi ne, %1, %c0_i32_0 : i32
    scf.if %2 {
      %cst_9 = arith.constant 0.000000e+00 : f32
      %15 = vector.broadcast %cst_9 : f32 to vector<16x128xf32>
      %c0_10 = arith.constant 0 : index
      %c0_11 = arith.constant 0 : index
      %16 = vector.load %arg7[%c0_10, %c0_11] : memref<16x128xf32, #tpu.memory_space<vmem>>, vector<16x128xf32>
      tpu.vector_store %arg7[%c0_10, %c0_11], %15 {strides = array<i32>} : memref<16x128xf32, #tpu.memory_space<vmem>>, vector<16x128xf32>,
    } else {
    }
    %c0_i32_1 = arith.constant 0 : i32
    %c32_i32 = arith.constant 32 : i32
    %3 = arith.muli %c0_i32_1, %c32_i32 : i32
    %4 = tpu.assume_multiple %3, 32 : i32
    %5 = arith.index_cast %4 : i32 to index
    %c0 = arith.constant 0 : index
    %c0_2 = arith.constant 0 : index
    %6 = vector.load %arg3[%5, %c0, %c0_2] : memref<32x16x128xbf16, #tpu.memory_space<vmem>>, vector<32x16x128xbf16>
    %c0_3 = arith.constant 0 : index
    %c0_4 = arith.constant 0 : index
    %7 = vector.load %arg7[%c0_3, %c0_4] : memref<16x128xf32, #tpu.memory_space<vmem>>, vector<16x128xf32>
    %8 = arith.extf %6 : vector<32x16x128xbf16> to vector<32x16x128xf32>
    %cst = arith.constant dense<0.000000e+00> : vector<16x128xf32>
    %9 = vector.multi_reduction <add>, %8, %cst [0] : vector<32x16x128xf32> to vector<16x128xf32>
    %10 = arith.addf %7, %9 : vector<16x128xf32>
    %c0_5 = arith.constant 0 : index
    %c0_6 = arith.constant 0 : index
    %11 = vector.load %arg7[%c0_5, %c0_6] : memref<16x128xf32, #tpu.memory_space<vmem>>, vector<16x128xf32>
    tpu.vector_store %arg7[%c0_5, %c0_6], %10 {strides = array<i32>} : memref<16x128xf32, #tpu.memory_space<vmem>>, vector<16x128xf32>,
    %c1_i32 = arith.constant 1 : i32
    %c0_i32_7 = arith.constant 0 : i32
    %12 = arith.cmpi eq, %arg1, %c0_i32_7 : i32
    %13 = arith.extui %12 : i1 to i32
    %c0_i32_8 = arith.constant 0 : i32
    %14 = arith.cmpi ne, %13, %c0_i32_8 : i32
    scf.if %14 {
      %c0_9 = arith.constant 0 : index
      %c0_10 = arith.constant 0 : index
      %15 = vector.load %arg7[%c0_9, %c0_10] : memref<16x128xf32, #tpu.memory_space<vmem>>, vector<16x128xf32>
      %c0_11 = arith.constant 0 : index
      %c0_12 = arith.constant 0 : index
      %16 = vector.load %arg2[%c0_11, %c0_12] : memref<16x1xf32, #tpu.memory_space<vmem>>, vector<16x1xf32>
      %17 = vector.broadcast %16 : vector<16x1xf32> to vector<16x128xf32>
      %18 = arith.mulf %15, %17 : vector<16x128xf32>
      %cst_13 = arith.constant 0.000000e+00 : f32
      %19 = vector.broadcast %cst_13 : f32 to vector<16x128xf32>
      %20 = arith.maximumf %18, %19 : vector<16x128xf32>
      %c0_14 = arith.constant 0 : index
      %c0_15 = arith.constant 0 : index
      %21 = vector.load %arg4[%c0_14, %c0_15] : memref<128x128xf32, #tpu.memory_space<vmem>>, vector<128x128xf32>
      %cst_16 = arith.constant dense<0.000000e+00> : vector<16x128xf32>
      %22 = tpu.matmul %20, %21, %cst_16 {dimension_numbers = #tpu.dot_dimension_numbers<[1], [0], [0], [1], [0, 0, 1, 1], [], []>} : vector<16x128xf32>, vector<128x128xf32>, vector<16x128xf32> -> vector<16x128xf32>
      %c0_17 = arith.constant 0 : index
      %c0_18 = arith.constant 0 : index
      %23 = vector.load %arg5[%c0_17, %c0_18] : memref<1x128xf32, #tpu.memory_space<vmem>>, vector<1x128xf32>
      %24 = vector.broadcast %23 : vector<1x128xf32> to vector<16x128xf32>
      %25 = arith.addf %22, %24 : vector<16x128xf32>
      %c0_19 = arith.constant 0 : index
      %c0_20 = arith.constant 0 : index
      %26 = vector.load %arg6[%c0_19, %c0_20] : memref<16x128xf32, #tpu.memory_space<vmem>>, vector<16x128xf32>
      tpu.vector_store %arg6[%c0_19, %c0_20], %25 {strides = array<i32>} : memref<16x128xf32, #tpu.memory_space<vmem>>, vector<16x128xf32>,
    } else {
    }
    return
  }
  func.func @transform_0(%arg0: i32, %arg1: i32) -> (i32, i32) {
    %c0_i32 = arith.constant 0 : i32
    %c0_i32_0 = arith.constant 0 : i32
    return %arg0, %c0_i32 : i32, i32
  }
  func.func @transform_1(%arg0: i32, %arg1: i32) -> (i32, i32, i32) {
    %c0_i32 = arith.constant 0 : i32
    %c0_i32_0 = arith.constant 0 : i32
    return %arg1, %arg0, %c0_i32 : i32, i32, i32
  }
  func.func @transform_2(%arg0: i32, %arg1: i32) -> (i32, i32) {
    %c0_i32 = arith.constant 0 : i32
    %c0_i32_0 = arith.constant 0 : i32
    %c0_i32_1 = arith.constant 0 : i32
    return %c0_i32, %c0_i32_0 : i32, i32
  }
  func.func @transform_3(%arg0: i32, %arg1: i32) -> (i32, i32) {
    %c0_i32 = arith.constant 0 : i32
    %c0_i32_0 = arith.constant 0 : i32
    %c0_i32_1 = arith.constant 0 : i32
    return %c0_i32, %c0_i32_0 : i32, i32
  }
  func.func @transform_4(%arg0: i32, %arg1: i32) -> (i32, i32) {
    %c0_i32 = arith.constant 0 : i32
    %c0_i32_0 = arith.constant 0 : i32
    return %arg0, %c0_i32 : i32, i32
  }
}

</mosaic_0001>

<bundles_post_ra>
// kernel: tpu_custom_call.1
= control target key start
LH: loop header
LB: loop body
LE: loop exit
PB: predicated region body
PF: predicated region fallthrough
CT: control target
= control target key end

     0   :  { %9 = vsyncpa [#allocation4], 0  ;;  %s661_s0 = inlined_call_operand.vmem [shape: f32[16,1], index: 0, kind: input, shape index: {}]   ;;  %s662_s1 = inlined_call_operand.hbm [shape: bf16[32,16,128], index: 1, kind: input, shape index: {}]   ;;  %s663_s2 = inlined_call_operand.hbm [shape: f32[128,128], index: 2, kind: input, shape index: {}]   ;;  %s664_s3 = inlined_call_operand.vmem [shape: f32[1,128], index: 3, kind: input, shape index: {}]   ;;  %s665_s4 = inlined_call_operand.hbm [shape: f32[16,128], index: 4, kind: output, shape index: {}]  }
   0x1   :  { %10 = vsyncpa [#allocation7], 0 }
   0x2   :  { %11 = vsyncpa [#allocation5], 0  ;;  %s18_s17 = sshll.u32 %s662_s1, 4  ;;  %s604_s18 = smov [#allocation3]   ;;  %s19_s17 = int_to_ptr.hbm [resolvable:$true] %s18_s17 }
   0x3   :  { %s20_s19 = sshll.u32 %s604_s18, 4  ;;  %s31_s22 = sshll.u32 %s663_s2, 4  ;;  %s21_s19 = int_to_ptr.vmem [resolvable:$true] %s20_s19  ;;  %s32_s22 = int_to_ptr.hbm [resolvable:$true] %s31_s22 }
   0x4   :  { %s605_s23 = smov 64   ;;  %s606_s24 = smov 4  }
   0x5   :  { %26 = dma.hbm_to_vmem [thread:$0]  %s19_s17, 4096, %s21_s19, [#allocation4], %s605_s23, %s605_s23, %s606_s24  }
   0x6   :  { %s607_s25 = smov [#allocation6]   ;;  %s608_s27 = smov 128  }
   0x7   :  { %s33_s26 = sshll.u32 %s607_s25, 4  ;;  %s609_s28 = smov 8   ;;  %s34_s26 = int_to_ptr.vmem [resolvable:$true] %s33_s26 }
   0x8   :  { %39 = dma.hbm_to_vmem [thread:$0]  %s32_s22, 2048, %s34_s26, [#allocation7], %s608_s27, %s608_s27, %s609_s28  }
   0x9   :  { %598 = dma.done.wait [#allocation4], 4096  }
   0xa   :  { %599 = vsyncadd [#allocation4], 4294963200 }
   0xb   :  { %600 = dma.done.wait [#allocation7], 2048  }
   0xc   :  { %601 = vsyncadd [#allocation7], 4294965248  ;;  %v610_v0 = vmov 0   ;;  %v260_v1 = vld [vmem:[%s661_s0] sm:$0xff]  ;;  %v291_v2 = vld [vmem:[#allocation6 + $0x78] sm:$0xff]  ;;  %s611_s6 = smov [#allocation8]  }
   0xd   :  { %524 = vset.pattern.permute.xlu0 %v610_v0  ;;  %296 = vmatpush.msra.mxu0 %v291_v2  ;;  %v290_v3 = vld [vmem:[#allocation6 + $0x70] sm:$0xff]  ;;  %v289_v4 = vld [vmem:[#allocation6 + $0x68] sm:$0xff]  ;;  %v288_v5 = vld [vmem:[#allocation6 + $0x60] sm:$0xff]  ;;  %s325_s7 = sshll.u32 %s611_s6, 4  ;;  %s327_s10 = sshll.u32 %s665_s4, 4  ;;  %s326_s7 = int_to_ptr.vmem [resolvable:$true] %s325_s7  ;;  %s328_s10 = int_to_ptr.hbm [resolvable:$true] %s327_s10 }
   0xe   :  { %264 = vperm.xlu0 %524, %v260_v1   ;;  %500 = vmatpush.msra.mxu1 %v291_v2  ;;  %v261_v6 = vld [vmem:[%s661_s0 + $0x8] sm:$0xff]  ;;  %v287_v7 = vld [vmem:[#allocation6 + $0x58] sm:$0xff]  ;;  %v286_v8 = vld [vmem:[#allocation6 + $0x50] sm:$0xff] }
   0xf   :  { %297 = vmatpush.msra.mxu0 %v290_v3  ;;  %v285_v9 = vld [vmem:[#allocation6 + $0x48] sm:$0xff]  ;;  %v284_v10 = vld [vmem:[#allocation6 + $0x40] sm:$0xff]  ;;  %v283_v11 = vld [vmem:[#allocation6 + $0x38] sm:$0xff] }
  0x10   :  { %501 = vmatpush.msra.mxu1 %v290_v3  ;;  %v282_v12 = vld [vmem:[#allocation6 + $0x30] sm:$0xff]  ;;  %v281_v13 = vld [vmem:[#allocation6 + $0x28] sm:$0xff]  ;;  %v342_v14 = vld [vmem:[#allocation3] sm:$0xff]  }
  0x11   :  { %298 = vmatpush.msra.mxu0 %v289_v4  ;;  %v469_v15 = vld [vmem:[#allocation3 + $0x8] sm:$0xff]   ;;  %v280_v16 = vld [vmem:[#allocation6 + $0x20] sm:$0xff]  ;;  %v343_v17 = vunpack.c.l.bf16 %v342_v14  ;;  %v470_v19 = vld [vmem:[#allocation3 + $0x10] sm:$0xff]   ;;  %v344_v33 = vunpack.c.h.bf16 %v342_v14 }
  0x12   :  { %502 = vmatpush.msra.mxu1 %v289_v4  ;;  %v347_v18 = vunpack.c.l.bf16 %v469_v15  ;;  %v279_v20 = vld [vmem:[#allocation6 + $0x18] sm:$0xff]  ;;  %v351_v21 = vunpack.c.l.bf16 %v470_v19  ;;  %v278_v24 = vld [vmem:[#allocation6 + $0x10] sm:$0xff]  ;;  %v472_v27 = vld [vmem:[#allocation3 + $0x20] sm:$0xff]   ;;  %v348_v34 = vunpack.c.h.bf16 %v469_v15  ;;  %v352_v38 = vunpack.c.h.bf16 %v470_v19 }
  0x13   :  { %299 = vmatpush.msra.mxu0 %v288_v5  ;;  %v471_v23 = vld [vmem:[#allocation3 + $0x18] sm:$0xff]   ;;  %v359_v28 = vunpack.c.l.bf16 %v472_v27  ;;  %v473_v30 = vld [vmem:[#allocation3 + $0x28] sm:$0xff]   ;;  %v474_v35 = vld [vmem:[#allocation3 + $0x30] sm:$0xff]   ;;  %v360_v48 = vunpack.c.h.bf16 %v472_v27 }
  0x14   :  { %503 = vmatpush.msra.mxu1 %v288_v5  ;;  %v189_v22 = vadd.f32 %v347_v18, %v343_v17  ;;  %v355_v25 = vunpack.c.l.bf16 %v471_v23  ;;  %v363_v31 = vunpack.c.l.bf16 %v473_v30  ;;  %v367_v36 = vunpack.c.l.bf16 %v474_v35  ;;  %v475_v40 = vld [vmem:[#allocation3 + $0x38] sm:$0xff]   ;;  %v476_v45 = vld [vmem:[#allocation3 + $0x40] sm:$0xff]   ;;  %v477_v50 = vld [vmem:[#allocation3 + $0x48] sm:$0xff]  }
  0x15   :  { %300 = vmatpush.msra.mxu0 %v287_v7  ;;  %v220_v39 = vadd.f32 %v348_v34, %v344_v33  ;;  %v371_v41 = vunpack.c.l.bf16 %v475_v40  ;;  %v356_v43 = vunpack.c.h.bf16 %v471_v23  ;;  %v375_v46 = vunpack.c.l.bf16 %v476_v45  ;;  %v478_v55 = vld [vmem:[#allocation3 + $0x50] sm:$0xff]   ;;  %v479_v60 = vld [vmem:[#allocation3 + $0x58] sm:$0xff]   ;;  %v480_v1 = vld [vmem:[#allocation3 + $0x60] sm:$0xff]  }
  0x16   :  { %269 = vperm.xlu0 %524, %v261_v6   ;;  %504 = vmatpush.msra.mxu1 %v287_v7  ;;  %v190_v26 = vadd.f32 %v351_v21, %v189_v22  ;;  %v379_v51 = vunpack.c.l.bf16 %v477_v50  ;;  %v364_v53 = vunpack.c.h.bf16 %v473_v30  ;;  %v383_v56 = vunpack.c.l.bf16 %v478_v55  ;;  %v481_v6 = vld [vmem:[#allocation3 + $0x68] sm:$0xff]   ;;  %v484_v21 = vld [vmem:[#allocation3 + $0x80] sm:$0xff]  }
  0x17   :  { %301 = vmatpush.msra.mxu0 %v286_v8  ;;  %v221_v44 = vadd.f32 %v352_v38, %v220_v39  ;;  %v368_v58 = vunpack.c.h.bf16 %v474_v35  ;;  %v387_v61 = vunpack.c.l.bf16 %v479_v60  ;;  %v372_v63 = vunpack.c.h.bf16 %v475_v40  ;;  %v487_v38 = vld [vmem:[#allocation3 + $0x98] sm:$0xff]  }
  0x18   :  { %505 = vmatpush.msra.mxu1 %v286_v8  ;;  %v191_v29 = vadd.f32 %v355_v25, %v190_v26  ;;  %v391_v2 = vunpack.c.l.bf16 %v480_v1  ;;  %v376_v4 = vunpack.c.h.bf16 %v476_v45  ;;  %v395_v7 = vunpack.c.l.bf16 %v481_v6  ;;  %v485_v26 = vld [vmem:[#allocation3 + $0x88] sm:$0xff]   ;;  %v488_v45 = vld [vmem:[#allocation3 + $0xa0] sm:$0xff]  }
  0x19   :  { %302 = vmatpush.msra.mxu0 %v285_v9  ;;  %v222_v49 = vadd.f32 %v356_v43, %v221_v44  ;;  %v384_v14 = vunpack.c.h.bf16 %v478_v55  ;;  %v388_v19 = vunpack.c.h.bf16 %v479_v60  ;;  %v407_v22 = vunpack.c.l.bf16 %v484_v21  ;;  %v490_v55 = vld [vmem:[#allocation3 + $0xb0] sm:$0xff]   ;;  %v491_v60 = vld [vmem:[#allocation3 + $0xb8] sm:$0xff]  }
  0x1a   :  { %506 = vmatpush.msra.mxu1 %v285_v9  ;;  %v192_v32 = vadd.f32 %v359_v28, %v191_v29  ;;  %v380_v9 = vunpack.c.h.bf16 %v477_v50  ;;  %v411_v27 = vunpack.c.l.bf16 %v485_v26  ;;  %v396_v29 = vunpack.c.h.bf16 %v481_v6  ;;  %v489_v50 = vld [vmem:[#allocation3 + $0xa8] sm:$0xff]  }
  0x1b   :  { %303 = vmatpush.msra.mxu0 %v284_v10  ;;  %v223_v54 = vadd.f32 %v360_v48, %v222_v49  ;;  %v408_v39 = vunpack.c.h.bf16 %v484_v21  ;;  %v412_v43 = vunpack.c.h.bf16 %v485_v26  ;;  %v493_v6 = vld [vmem:[#allocation3 + $0xc8] sm:$0xff]  }
  0x1c   :  { %507 = vmatpush.msra.mxu1 %v284_v10  ;;  %v193_v37 = vadd.f32 %v363_v31, %v192_v32  ;;  %v486_v31 = vld [vmem:[#allocation3 + $0x90] sm:$0xff]   ;;  %v444_v21 = vunpack.c.h.bf16 %v493_v6 }
  0x1d   :  { %304 = vmatpush.msra.mxu0 %v283_v11  ;;  %v224_v59 = vadd.f32 %v364_v53, %v223_v54  ;;  %v415_v34 = vunpack.c.l.bf16 %v486_v31  ;;  %v416_v48 = vunpack.c.h.bf16 %v486_v31  ;;  %v420_v53 = vunpack.c.h.bf16 %v487_v38 }
  0x1e   :  { %508 = vmatpush.msra.mxu1 %v283_v11  ;;  %v194_v42 = vadd.f32 %v367_v36, %v193_v37  ;;  %v482_v11 = vld [vmem:[#allocation3 + $0x70] sm:$0xff]  }
  0x1f   :  { %305 = vmatpush.msra.mxu0 %v282_v12  ;;  %v225_v0 = vadd.f32 %v368_v58, %v224_v59  ;;  %v400_v32 = vunpack.c.h.bf16 %v482_v11  ;;  %v424_v58 = vunpack.c.h.bf16 %v488_v45 }
  0x20   :  { %509 = vmatpush.msra.mxu1 %v282_v12  ;;  %v195_v47 = vadd.f32 %v371_v41, %v194_v42  ;;  %v399_v12 = vunpack.c.l.bf16 %v482_v11  ;;  %v419_v41 = vunpack.c.l.bf16 %v487_v38  ;;  %v499_v38 = vld [vmem:[#allocation3 + $0xf8] sm:$0xff]  }
  0x21   :  { %306 = vmatpush.msra.mxu0 %v281_v13  ;;  %v226_v5 = vadd.f32 %v372_v63, %v225_v0  ;;  %v428_v63 = vunpack.c.h.bf16 %v489_v50 }
  0x22   :  { %510 = vmatpush.msra.mxu1 %v281_v13  ;;  %v196_v52 = vadd.f32 %v375_v46, %v195_v47  ;;  %v423_v46 = vunpack.c.l.bf16 %v488_v45 }
  0x23   :  { %307 = vmatpush.msra.mxu0 %v280_v16  ;;  %v227_v10 = vadd.f32 %v376_v4, %v226_v5  ;;  %v432_v4 = vunpack.c.h.bf16 %v490_v55 }
  0x24   :  { %511 = vmatpush.msra.mxu1 %v280_v16  ;;  %v197_v57 = vadd.f32 %v379_v51, %v196_v52  ;;  %v483_v16 = vld [vmem:[#allocation3 + $0x78] sm:$0xff]   ;;  %v427_v51 = vunpack.c.l.bf16 %v489_v50 }
  0x25   :  { %308 = vmatpush.msra.mxu0 %v279_v20  ;;  %v228_v15 = vadd.f32 %v380_v9, %v227_v10  ;;  %v403_v17 = vunpack.c.l.bf16 %v483_v16  ;;  %v404_v36 = vunpack.c.h.bf16 %v483_v16  ;;  %v277_v9 = vld [vmem:[#allocation6 + $0x8] sm:$0xff]  ;;  %v436_v10 = vunpack.c.h.bf16 %v491_v60 }
  0x26   :  { %512 = vmatpush.msra.mxu1 %v279_v20  ;;  %v198_v62 = vadd.f32 %v383_v56, %v197_v57  ;;  %v431_v56 = vunpack.c.l.bf16 %v490_v55  ;;  %v525_v55 = vld [vmem:[%s664_s3] ss:$0 sm:$0xff] }
  0x27   :  { %309 = vmatpush.msra.mxu0 %v278_v24  ;;  %v229_v20 = vadd.f32 %v384_v14, %v228_v15 }
  0x28   :  { %513 = vmatpush.msra.mxu1 %v278_v24  ;;  %v199_v3 = vadd.f32 %v387_v61, %v198_v62  ;;  %v392_v24 = vunpack.c.h.bf16 %v480_v1  ;;  %v435_v61 = vunpack.c.l.bf16 %v491_v60  ;;  %v492_v1 = vld [vmem:[#allocation3 + $0xc0] sm:$0xff]  }
  0x29   :  { %v230_v25 = vadd.f32 %v388_v19, %v229_v20  ;;  %310 = vmatpush.msra.mxu0 %v277_v9  ;;  %v440_v16 = vunpack.c.h.bf16 %v492_v1 }
  0x2a   :  { %v200_v8 = vadd.f32 %v391_v2, %v199_v3  ;;  %v439_v2 = vunpack.c.l.bf16 %v492_v1  ;;  %514 = vmatpush.msra.mxu1 %v277_v9 }
  0x2b   :  { %v231_v30 = vadd.f32 %v392_v24, %v230_v25 }
  0x2c   :  { %v201_v13 = vadd.f32 %v395_v7, %v200_v8  ;;  %v443_v7 = vunpack.c.l.bf16 %v493_v6 }
  0x2d   :  { %v232_v33 = vadd.f32 %v396_v29, %v231_v30 }
  0x2e   :  { %v202_v18 = vadd.f32 %v399_v12, %v201_v13  ;;  %v494_v12 = vld [vmem:[#allocation3 + $0xd0] sm:$0xff]   ;;  %v276_v13 = vld [vmem:[#allocation6] sm:$0xff] }
  0x2f   :  { %v233_v37 = vadd.f32 %v400_v32, %v232_v33  ;;  %311 = vmatpush.msra.mxu0 %v276_v13  ;;  %515 = vmatpush.msra.mxu1 %v276_v13  ;;  %v447_v14 = vunpack.c.l.bf16 %v494_v12  ;;  %v448_v26 = vunpack.c.h.bf16 %v494_v12  ;;  %v498_v33 = vld [vmem:[#allocation3 + $0xf0] sm:$0xff]  }
  0x30   :  { %v203_v23 = vadd.f32 %v403_v17, %v202_v18  ;;  %v495_v18 = vld [vmem:[#allocation3 + $0xd8] sm:$0xff]  }
  0x31   :  { %v234_v40 = vadd.f32 %v404_v36, %v233_v37  ;;  %v451_v19 = vunpack.c.l.bf16 %v495_v18  ;;  %v452_v31 = vunpack.c.h.bf16 %v495_v18 }
  0x32   :  { %v204_v28 = vadd.f32 %v407_v22, %v203_v23  ;;  %v496_v23 = vld [vmem:[#allocation3 + $0xe0] sm:$0xff]  }
  0x33   :  { %v235_v44 = vadd.f32 %v408_v39, %v234_v40  ;;  %v455_v24 = vunpack.c.l.bf16 %v496_v23  ;;  %v456_v36 = vunpack.c.h.bf16 %v496_v23  ;;  %v467_v39 = vunpack.c.l.bf16 %v499_v38 }
  0x34   :  { %v205_v35 = vadd.f32 %v411_v27, %v204_v28  ;;  %v497_v28 = vld [vmem:[#allocation3 + $0xe8] sm:$0xff]  }
  0x35   :  { %v236_v49 = vadd.f32 %v412_v43, %v235_v44  ;;  %v459_v29 = vunpack.c.l.bf16 %v497_v28  ;;  %v464_v44 = vunpack.c.h.bf16 %v498_v33 }
  0x36   :  { %v206_v42 = vadd.f32 %v415_v34, %v205_v35  ;;  %v463_v34 = vunpack.c.l.bf16 %v498_v33 }
  0x37   :  { %v237_v54 = vadd.f32 %v416_v48, %v236_v49  ;;  %v468_v48 = vunpack.c.h.bf16 %v499_v38 }
  0x38   :  { %v207_v47 = vadd.f32 %v419_v41, %v206_v42  ;;  %v460_v41 = vunpack.c.h.bf16 %v497_v28 }
  0x39   :  { %v238_v59 = vadd.f32 %v420_v53, %v237_v54 }
  0x3a   :  { %v208_v52 = vadd.f32 %v423_v46, %v207_v47 }
  0x3b   :  { %v239_v0 = vadd.f32 %v424_v58, %v238_v59 }
  0x3c   :  { %v209_v57 = vadd.f32 %v427_v51, %v208_v52 }
  0x3d   :  { %v240_v5 = vadd.f32 %v428_v63, %v239_v0 }
  0x3e   :  { %v210_v62 = vadd.f32 %v431_v56, %v209_v57 }
  0x3f   :  { %v241_v11 = vadd.f32 %v432_v4, %v240_v5 }
  0x40   :  { %v211_v3 = vadd.f32 %v435_v61, %v210_v62 }
  0x41   :  { %v242_v17 = vadd.f32 %v436_v10, %v241_v11 }
  0x42   :  { %v212_v8 = vadd.f32 %v439_v2, %v211_v3 }
  0x43   :  { %v243_v22 = vadd.f32 %v440_v16, %v242_v17 }
  0x44   :  { %v213_v15 = vadd.f32 %v443_v7, %v212_v8 }
  0x45   :  { %v244_v27 = vadd.f32 %v444_v21, %v243_v22 }
  0x46   :  { %v214_v20 = vadd.f32 %v447_v14, %v213_v15 }
  0x47   :  { %v245_v32 = vadd.f32 %v448_v26, %v244_v27 }
  0x48   :  { %v215_v25 = vadd.f32 %v451_v19, %v214_v20 }
  0x49   :  { %v246_v37 = vadd.f32 %v452_v31, %v245_v32 }
  0x4a   :  { %v216_v30 = vadd.f32 %v455_v24, %v215_v25 }
  0x4b   :  { %v247_v42 = vadd.f32 %v456_v36, %v246_v37 }
  0x4c   :  { %v217_v35 = vadd.f32 %v459_v29, %v216_v30 }
  0x4d   :  { %v248_v45 = vadd.f32 %v460_v41, %v247_v42 }
  0x4e   :  { %v218_v40 = vadd.f32 %v463_v34, %v217_v35 }
  0x4f   :  { %v249_v49 = vadd.f32 %v464_v44, %v248_v45 }
  0x50   :  { %v219_v43 = vadd.f32 %v467_v39, %v218_v40 }
  0x51   :  { %v250_v51 = vadd.f32 %v468_v48, %v249_v49 }
  0x80   :  { %v265_v46 = vpop.permute.xlu0 %264 }
  0x81   :  { %v272_v47 = vmul.f32 %v265_v46, %v219_v43 }
  0x83   :  { %v274_v50 = vmax.f32 %v272_v47, 0.0 }
  0x85   :  { %312 = vmatmul.f32.vlgmr.msra.gmra.mxu0 %v274_v50 }
  0x88   :  { %v270_v52 = vpop.permute.xlu0 %269 }
  0x89   :  { %v273_v53 = vmul.f32 %v270_v52, %v250_v51 }
  0x8b   :  { %v275_v54 = vmax.f32 %v273_v53, 0.0 }
  0x8d   :  { %315 = vmatmul.f32.vlgmr.msra.gmra.mxu1 %v275_v54 }
 0x102   :  { %v313_v56 = vpop.f32.mrf.mxu0 }
 0x103   :  { %v314_v57 = vadd.f32 %v525_v55, %v313_v56 }
 0x105   :  { %319 = vst [vmem:[#allocation8] sm:$0xff] %v314_v57 }
 0x10a   :  { %v316_v58 = vpop.f32.mrf.mxu1 }
 0x10b   :  { %v317_v59 = vadd.f32 %v525_v55, %v316_v58 }
 0x10d   :  { %320 = vst [vmem:[#allocation8 + $0x8] sm:$0xff] %v317_v59 }
 0x10e   :  { %333 = dma.vmem_to_hbm [thread:$0]  %s326_s7, 256, %s328_s10, [#allocation5], %s608_s27, %s608_s27, %s609_s28  }
 0x10f   :  { %602 = dma.done.wait [#allocation5], 256  }
 0x110   :  { %603 = vsyncadd [#allocation5], 4294967040 }
 0x111   :  { %338 = vsyncpa [#allocation4], 1 }
 0x112   :  { %339 = vsyncpa [#allocation7], 1 }
 0x113   :  { %340 = vsyncpa [#allocation5], 1 }

</bundles_post_ra>
